<compile_context>
chip_gen: v7x
topology: tpu7x:2x2x1
jax: 0.10.0
libtpu: 0.0.40
codegen_flags: <defaults>
</compile_context>

<pallas_src>
import functools

import jax
import jax.numpy as jnp
from jax.experimental import pallas as pl
from jax.experimental.pallas import tpu as pltpu

_LANE = 128
_SUBLANE = 8
_ALPHA = 1.0  # FocalLoss defaults
_GAMMA = 2.0  # gamma == 2 -> square


def _round_up(x, m):
    return ((x + m - 1) // m) * m


def _focal_partial_kernel(p_ref, t_ref, o_ref, *, block_rows, n_valid, needs_mask):
    """One grid step: focal loss on a (block_rows, 128) tile -> (8, 128) partial sum."""
    p = p_ref[...].astype(jnp.float32)
    t = t_ref[...].astype(jnp.float32)

    # F.binary_cross_entropy (no reduce): clamp logs at -100 like PyTorch.
    # The general 2-log + exp form is kept so soft (non-{0,1}) targets match
    # PyTorch exactly; for hard targets pt = t*p + (1-t)*(1-p) would drop two
    # transcendentals (EUP relief on v7x/v5e) at the cost of generality.
    log_p = jnp.maximum(jnp.log(p), -100.0)
    log_1mp = jnp.maximum(jnp.log(1.0 - p), -100.0)
    bce = -(t * log_p + (1.0 - t) * log_1mp)

    pt = jnp.exp(-bce)
    one_minus_pt = 1.0 - pt
    f_loss = _ALPHA * (one_minus_pt * one_minus_pt) * bce  # gamma = 2

    if needs_mask:
        # Mask out-of-range elements (partial last block and/or flat-pad tail).
        base_row = pl.program_id(0) * block_rows
        row_ids = jax.lax.broadcasted_iota(jnp.int32, (block_rows, _LANE), 0) + base_row
        lane_ids = jax.lax.broadcasted_iota(jnp.int32, (block_rows, _LANE), 1)
        flat_idx = row_ids * _LANE + lane_ids
        f_loss = jnp.where(flat_idx < n_valid, f_loss, 0.0)

    # (block_rows, 128) -> (block_rows//8, 8, 128); reducing the leading axis is
    # pure VPU accumulation (no cross-lane/sublane XLU work), and the (8, 128)
    # lane-dense partial sum is stored once per grid step.
    o_ref[...] = jnp.sum(
        f_loss.reshape(block_rows // _SUBLANE, _SUBLANE, _LANE), axis=0
    )


@functools.partial(jax.jit, static_argnames=("block_rows",))
def only_focal_loss(output, y_true, *, block_rows=2048):
    """JAX/Pallas equivalent of OnlyFocalLoss().forward(output, y_true).

    output, y_true: [N, C, H, W] probabilities / targets (any float dtype).
    Returns a scalar float32 loss.
    """
    assert output.shape == y_true.shape
    n_valid = output.size  # = N*C*H*W; equals C * (per-channel count)

    flat_p = output.reshape(-1)
    flat_t = y_true.reshape(-1)

    rows = pl.cdiv(n_valid, _LANE)
    pad = rows * _LANE - n_valid
    if pad:
        # Rare path (total not a multiple of 128). Pad values are masked in the
        # kernel anyway; p = t = 1 also gives exactly zero loss.
        flat_p = jnp.pad(flat_p, (0, pad), constant_values=1)
        flat_t = jnp.pad(flat_t, (0, pad), constant_values=1)

    p2 = flat_p.reshape(rows, _LANE)
    t2 = flat_t.reshape(rows, _LANE)

    # Block row count: large (amortize per-step overhead), multiple of 8,
    # but no larger than needed for small inputs.
    br = min(block_rows, _round_up(rows, _SUBLANE))
    br = max(_SUBLANE, (br // _SUBLANE) * _SUBLANE)
    n_blocks = pl.cdiv(rows, br)
    needs_mask = (n_blocks * br * _LANE) != n_valid

    kernel = functools.partial(
        _focal_partial_kernel, block_rows=br, n_valid=n_valid, needs_mask=needs_mask
    )

    partials = pl.pallas_call(
        kernel,
        out_shape=jax.ShapeDtypeStruct((_SUBLANE, n_blocks * _LANE), jnp.float32),
        grid_spec=pltpu.PrefetchScalarGridSpec(
            num_scalar_prefetch=0,
            grid=(n_blocks,),
            in_specs=[
                pl.BlockSpec((br, _LANE), lambda i: (i, 0)),
                pl.BlockSpec((br, _LANE), lambda i: (i, 0)),
            ],
            out_specs=pl.BlockSpec((_SUBLANE, _LANE), lambda i: (0, i)),
        ),
        compiler_params=pltpu.CompilerParams(
            # Every grid step writes its own output block -> fully parallel
            # (shards across both TensorCores on v7x; no-op on v5e/v6e).
            dimension_semantics=("parallel",),
        ),
    )(p2, t2)

    # OnlyFocalLoss: (1/C) * sum_c mean(F_loss[:, c]) == sum(F_loss) / (N*C*H*W)
    return jnp.sum(partials) / jnp.float32(n_valid)


def _reference(output, y_true):
    p = output.astype(jnp.float32)
    t = y_true.astype(jnp.float32)
    log_p = jnp.maximum(jnp.log(p), -100.0)
    log_1mp = jnp.maximum(jnp.log(1.0 - p), -100.0)
    bce = -(t * log_p + (1.0 - t) * log_1mp)
    pt = jnp.exp(-bce)
    fl = _ALPHA * (1.0 - pt) ** 2 * bce
    # per-channel mean, averaged over channels (matches the torch loop exactly)
    c = output.shape[1]
    per_c = jnp.stack([jnp.mean(fl[:, i]) for i in range(c)])
    return jnp.sum(per_c) / c


if __name__ == "__main__":
    key = jax.random.PRNGKey(0)
    k1, k2, k3, k4 = jax.random.split(key, 4)

    # Main case: lane-aligned NCHW.
    N, C, H, W = 2, 4, 16, 16
    output = jax.random.uniform(k1, (N, C, H, W), jnp.float32,
                                minval=0.02, maxval=0.98)
    y_true = (jax.random.uniform(k2, (N, C, H, W)) > 0.5).astype(jnp.float32)

    loss = jax.block_until_ready(only_focal_loss(output, y_true))
    ref = _reference(output, y_true)
    assert jnp.allclose(loss, ref, rtol=1e-5, atol=1e-6), (loss, ref)

    # Ragged case: total element count not a multiple of 128 (exercises the
    # in-kernel tail mask / partial block path).
    out2 = jax.random.uniform(k3, (2, 3, 7, 5), jnp.float32,
                              minval=0.02, maxval=0.98)
    tgt2 = (jax.random.uniform(k4, (2, 3, 7, 5)) > 0.5).astype(jnp.float32)
    loss2 = jax.block_until_ready(only_focal_loss(out2, tgt2))
    ref2 = _reference(out2, tgt2)
    assert jnp.allclose(loss2, ref2, rtol=1e-5, atol=1e-6), (loss2, ref2)

    print("KERNEL_OK")
</pallas_src>

<mosaic_0001>
module attributes {stable_mosaic.version = 11 : i64} {
  func.func @_focal_partial_kernel(%arg0: i32, %arg1: memref<16x128xf32, #tpu.memory_space<vmem>>, %arg2: memref<16x128xf32, #tpu.memory_space<vmem>>, %arg3: memref<8x128xf32, #tpu.memory_space<vmem>>) attributes {dimension_semantics = [#tpu.dimension_semantics<parallel>], iteration_bounds = array<i64: 1>, scalar_prefetch = 0 : i64, scratch_operands = 0 : i64, tpu.core_type = #tpu.core_type<tc>, window_params = [{transform_indices = @transform_0, window_bounds = array<i64: 16, 128>}, {transform_indices = @transform_1, window_bounds = array<i64: 16, 128>}, {transform_indices = @transform_2, window_bounds = array<i64: 8, 128>}]} {
    %c0 = arith.constant 0 : index
    %c0_0 = arith.constant 0 : index
    %0 = vector.load %arg1[%c0, %c0_0] : memref<16x128xf32, #tpu.memory_space<vmem>>, vector<16x128xf32>
    %c0_1 = arith.constant 0 : index
    %c0_2 = arith.constant 0 : index
    %1 = vector.load %arg2[%c0_1, %c0_2] : memref<16x128xf32, #tpu.memory_space<vmem>>, vector<16x128xf32>
    %2 = math.log %0 : vector<16x128xf32>
    %cst = arith.constant -1.000000e+02 : f32
    %3 = vector.broadcast %cst : f32 to vector<16x128xf32>
    %4 = arith.maximumf %2, %3 : vector<16x128xf32>
    %cst_3 = arith.constant 1.000000e+00 : f32
    %5 = vector.broadcast %cst_3 : f32 to vector<16x128xf32>
    %6 = arith.subf %5, %0 : vector<16x128xf32>
    %7 = math.log %6 : vector<16x128xf32>
    %cst_4 = arith.constant -1.000000e+02 : f32
    %8 = vector.broadcast %cst_4 : f32 to vector<16x128xf32>
    %9 = arith.maximumf %7, %8 : vector<16x128xf32>
    %10 = arith.mulf %1, %4 : vector<16x128xf32>
    %cst_5 = arith.constant 1.000000e+00 : f32
    %11 = vector.broadcast %cst_5 : f32 to vector<16x128xf32>
    %12 = arith.subf %11, %1 : vector<16x128xf32>
    %13 = arith.mulf %12, %9 : vector<16x128xf32>
    %14 = arith.addf %10, %13 : vector<16x128xf32>
    %cst_6 = arith.constant 0.000000e+00 : f32
    %15 = vector.broadcast %cst_6 : f32 to vector<16x128xf32>
    %16 = arith.subf %15, %14 : vector<16x128xf32>
    %cst_7 = arith.constant 0.000000e+00 : f32
    %17 = vector.broadcast %cst_7 : f32 to vector<16x128xf32>
    %18 = arith.subf %17, %16 : vector<16x128xf32>
    %19 = math.exp %18 : vector<16x128xf32>
    %cst_8 = arith.constant 1.000000e+00 : f32
    %20 = vector.broadcast %cst_8 : f32 to vector<16x128xf32>
    %21 = arith.subf %20, %19 : vector<16x128xf32>
    %22 = arith.mulf %21, %21 : vector<16x128xf32>
    %cst_9 = arith.constant 1.000000e+00 : f32
    %23 = vector.broadcast %cst_9 : f32 to vector<16x128xf32>
    %24 = arith.mulf %23, %22 : vector<16x128xf32>
    %25 = arith.mulf %24, %16 : vector<16x128xf32>
    %26 = vector.shape_cast %25 : vector<16x128xf32> to vector<2x8x128xf32>
    %cst_10 = arith.constant dense<0.000000e+00> : vector<8x128xf32>
    %27 = vector.multi_reduction <add>, %26, %cst_10 [0] : vector<2x8x128xf32> to vector<8x128xf32>
    %c0_11 = arith.constant 0 : index
    %c0_12 = arith.constant 0 : index
    %28 = vector.load %arg3[%c0_11, %c0_12] : memref<8x128xf32, #tpu.memory_space<vmem>>, vector<8x128xf32>
    tpu.vector_store %arg3[%c0_11, %c0_12], %27 {strides = array<i32>} : memref<8x128xf32, #tpu.memory_space<vmem>>, vector<8x128xf32>,
    return
  }
  func.func @transform_0(%arg0: i32) -> (i32, i32) {
    %c0_i32 = arith.constant 0 : i32
    %c0_i32_0 = arith.constant 0 : i32
    return %arg0, %c0_i32 : i32, i32
  }
  func.func @transform_1(%arg0: i32) -> (i32, i32) {
    %c0_i32 = arith.constant 0 : i32
    %c0_i32_0 = arith.constant 0 : i32
    return %arg0, %c0_i32 : i32, i32
  }
  func.func @transform_2(%arg0: i32) -> (i32, i32) {
    %c0_i32 = arith.constant 0 : i32
    %c0_i32_0 = arith.constant 0 : i32
    return %c0_i32, %arg0 : i32, i32
  }
}

</mosaic_0001>

<bundles_post_ra>
// kernel: only_focal_loss.1
= control target key start
LH: loop header
LB: loop body
LE: loop exit
PB: predicated region body
PF: predicated region fallthrough
CT: control target
= control target key end

     0   :  { %s99_s0 = inlined_call_operand.vmem [shape: f32[16,128], index: 0, kind: input, shape index: {}]   ;;  %s100_s1 = inlined_call_operand.vmem [shape: f32[16,128], index: 1, kind: input, shape index: {}]   ;;  %s101_s2 = inlined_call_operand.vmem [shape: f32[8,128], index: 2, kind: output, shape index: {}]  }
   0x1   :  { %v11_v0 = vld [vmem:[%s99_s0] sm:$0xff]  ;;  %v12_v1 = vld [vmem:[%s99_s0 + $0x8] sm:$0xff] }
   0x2   :  { %57 = vlog2.f32 %v11_v0  ;;  %v21_v2 = vsub.f32 1.0, %v11_v0  ;;  %v22_v3 = vsub.f32 1.0, %v12_v1  ;;  %v13_v5 = vld [vmem:[%s100_s1] sm:$0xff]  ;;  %v14_v7 = vld [vmem:[%s100_s1 + $0x8] sm:$0xff] }
   0x3   :  { %59 = vlog2.f32 %v12_v1  ;;  %v31_v14 = vsub.f32 1.0, %v13_v5  ;;  %v32_v17 = vsub.f32 1.0, %v14_v7 }
   0x4   :  { %61 = vlog2.f32 %v21_v2 }
   0x5   :  { %63 = vlog2.f32 %v22_v3 }
   0xc   :  { %v58_v4 = vpop.eup %57 }
   0xd   :  { %v60_v6 = vpop.eup %59  ;;  %v16_v8 = vmul.f32 0.6931472, %v58_v4 }
   0xe   :  { %v62_v9 = vpop.eup %61  ;;  %v18_v10 = vmul.f32 0.6931472, %v60_v6 }
   0xf   :  { %v64_v11 = vpop.eup %63  ;;  %v19_v12 = vmax.f32 %v16_v8, -100.0  ;;  %v24_v13 = vmul.f32 0.6931472, %v62_v9 }
  0x10   :  { %v20_v15 = vmax.f32 %v18_v10, -100.0  ;;  %v26_v16 = vmul.f32 0.6931472, %v64_v11 }
  0x11   :  { %v27_v18 = vmax.f32 %v24_v13, -100.0  ;;  %v29_v19 = vmul.f32 %v19_v12, %v13_v5 }
  0x12   :  { %v28_v20 = vmax.f32 %v26_v16, -100.0  ;;  %v30_v21 = vmul.f32 %v20_v15, %v14_v7 }
  0x13   :  { %v33_v22 = vmul.f32 %v31_v14, %v27_v18 }
  0x14   :  { %v34_v23 = vmul.f32 %v32_v17, %v28_v20 }
  0x15   :  { %v35_v24 = vadd.f32 %v33_v22, %v29_v19 }
  0x16   :  { %v36_v25 = vadd.f32 %v34_v23, %v30_v21 }
  0x17   :  { %v37_v26 = vsub.f32 0.0, %v35_v24 }
  0x18   :  { %v38_v27 = vsub.f32 0.0, %v36_v25 }
  0x19   :  { %v39_v28 = vsub.f32 0.0, %v37_v26 }
  0x1a   :  { %v40_v29 = vsub.f32 0.0, %v38_v27 }
  0x1b   :  { %v41_v30 = vmul.f32 1.442695, %v39_v28 }
  0x1c   :  { %v43_v31 = vmul.f32 1.442695, %v40_v29 }
  0x1d   :  { %65 = vpow2.f32 %v41_v30 }
  0x1e   :  { %67 = vpow2.f32 %v43_v31 }
  0x27   :  { %v66_v32 = vpop.eup %65 }
  0x28   :  { %v68_v33 = vpop.eup %67  ;;  %v45_v34 = vsub.f32 1.0, %v66_v32 }
  0x29   :  { %v46_v35 = vsub.f32 1.0, %v68_v33 }
  0x2a   :  { %v47_v36 = vmul.f32 %v45_v34, %v45_v34 }
  0x2b   :  { %v48_v37 = vmul.f32 %v46_v35, %v46_v35 }
  0x2c   :  { %v49_v38 = vmul.f32 %v47_v36, %v37_v26 }
  0x2d   :  { %v50_v39 = vmul.f32 %v48_v37, %v38_v27 }
  0x2f   :  { %v51_v40 = vadd.f32 %v50_v39, %v49_v38 }
  0x31   :  { %52 = vst [vmem:[%s101_s2] sm:$0xff] %v51_v40 }

</bundles_post_ra>
